<compile_context>
chip_gen: v5e
topology: v5e:2x2
jax: 0.10.0
libtpu: 0.0.40
codegen_flags: <defaults>
</compile_context>

<pallas_src>
import functools

import jax
import jax.numpy as jnp
from jax.experimental import pallas as pl
from jax.experimental.pallas import tpu as pltpu


def _softplus(x):
    # numerically stable softplus: max(x,0) + log1p(exp(-|x|))
    return jnp.maximum(x, 0.0) + jnp.log1p(jnp.exp(-jnp.abs(x)))


def score_nn_kernel(yt_ref, w1t_ref, b1_ref, w2t_ref, b2_ref, out_ref):
    # yt_ref:  (L, TN)   -- N (batch*samples) on the lane axis, native dtype
    # w1t_ref: (H, L)    -- resident across the grid
    # b1_ref:  (H, 1)
    # w2t_ref: (1, H)
    # b2_ref:  (1,)      -- SMEM scalar
    # out_ref: (1, TN)   -- lane-dense output slab
    yt = yt_ref[...].astype(jnp.float32)
    h = jnp.dot(w1t_ref[...], yt, preferred_element_type=jnp.float32) + b1_ref[...]
    h = _softplus(h)
    s = jnp.dot(w2t_ref[...], h, preferred_element_type=jnp.float32)
    out_ref[...] = s + b2_ref[0]


def _round_up(x, m):
    return (x + m - 1) // m * m


def _pick_lane_tile(n, max_tile, l, itemsize):
    """Pick the lane-tile TN (multiple of 128) and padded N minimizing
    (padded columns) + (grid steps) * (per-step overhead in column-equivalents),
    under an ~8 MiB VMEM budget for the double-buffered y tile."""
    vmem_budget = 8 * 1024 * 1024
    cap = max(128, min(max_tile, vmem_budget // max(1, 2 * l * itemsize)))
    cap -= cap % 128
    n128 = _round_up(n, 128)
    cap = min(cap, n128)
    step_cost = 1024  # ~600-cycle per-grid-step overhead ~ 1024 columns of work
    best = None
    for tn in range(128, cap + 1, 128):
        steps = -(-n128 // tn)
        cost = steps * tn + steps * step_cost
        if best is None or cost < best[0]:
            best = (cost, tn, steps * tn)
    return best[1], best[2]


@functools.partial(jax.jit, static_argnames=("tile_n",))
def score_nn_forward(x, y, params, *, tile_n=2048):
    """Mirrors ScoreNN.forward(x, y, buffer): local_score is None in the base
    class, so score == global_score(y). Returns (batch, num_samples) f32."""
    del x  # unused: compute_local_score returns None in the base class
    w1, b1, w2, b2 = params
    B, S, L = y.shape
    H = w1.shape[1]
    N = B * S

    tn, n_pad = _pick_lane_tile(N, tile_n, L, y.dtype.itemsize)

    # N on the lane axis: dense vregs for loads/compute/stores.
    yt = y.reshape(N, L).T                              # (L, N), native dtype
    if n_pad != N:
        yt = jnp.pad(yt, ((0, 0), (0, n_pad - N)))      # zero-pad extra columns

    w1t = w1.T.astype(jnp.float32)                      # (H, L)
    b1c = b1.reshape(H, 1).astype(jnp.float32)          # (H, 1)
    w2t = w2.T.astype(jnp.float32)                      # (1, H)
    b2s = b2.reshape(1).astype(jnp.float32)             # (1,) scalar -> SMEM

    cost = pl.CostEstimate(
        flops=2 * n_pad * L * H + 2 * n_pad * H,
        transcendentals=2 * n_pad * H,
        bytes_accessed=(n_pad * L * y.dtype.itemsize + n_pad * 4
                        + (L * H + 2 * H + 1) * 4),
    )

    out2d = pl.pallas_call(
        score_nn_kernel,
        out_shape=jax.ShapeDtypeStruct((1, n_pad), jnp.float32),
        grid=(n_pad // tn,),
        in_specs=[
            pl.BlockSpec((L, tn), lambda i: (0, i)),            # y tile (pipelined)
            pl.BlockSpec((H, L), lambda i: (0, 0)),             # weights resident
            pl.BlockSpec((H, 1), lambda i: (0, 0)),
            pl.BlockSpec((1, H), lambda i: (0, 0)),
            pl.BlockSpec(memory_space=pltpu.MemorySpace.SMEM),  # b2 scalar
        ],
        out_specs=pl.BlockSpec((1, tn), lambda i: (0, i)),      # lane-dense output
        compiler_params=pltpu.CompilerParams(
            dimension_semantics=("parallel",)),
        cost_estimate=cost,
    )(yt, w1t, b1c, w2t, b2s)

    return out2d[0, :N].reshape(B, S)


def init_params(num_labels, hidden, key):
    k1, k2, k3, k4 = jax.random.split(key, 4)
    w1 = jax.random.normal(k1, (num_labels, hidden), jnp.float32) * 0.1
    b1 = jax.random.normal(k2, (1, hidden), jnp.float32) * 0.01
    w2 = jax.random.normal(k3, (hidden, 1), jnp.float32) * 0.1
    b2 = jax.random.normal(k4, (1, 1), jnp.float32) * 0.01
    return w1, b1, w2, b2


def _reference(y, params):
    w1, b1, w2, b2 = params
    B, S, L = y.shape
    h = jax.nn.softplus(y.reshape(-1, L).astype(jnp.float32) @ w1 + b1)
    return (h @ w2 + b2).reshape(B, S)


if __name__ == "__main__":
    key = jax.random.PRNGKey(0)
    kx, ky, kp, ky2 = jax.random.split(key, 4)

    batch, num_samples, num_labels, hidden = 2, 8, 16, 32

    # x is arbitrary task input (unused by the base-class forward path).
    x = jax.random.normal(kx, (batch, num_labels), jnp.float32)
    # y: (batch, num_samples, num_labels) — e.g. sampled label probabilities.
    y = jax.nn.sigmoid(
        jax.random.normal(ky, (batch, num_samples, num_labels), jnp.float32))

    params = init_params(num_labels, hidden, kp)

    score = jax.block_until_ready(score_nn_forward(x, y, params))
    ref = _reference(y, params)
    assert score.shape == (batch, num_samples)
    assert jnp.allclose(score, ref, atol=1e-5, rtol=1e-5)

    # Second check: larger N = 1200 exercises the padding / tile-selection path.
    y_big = jax.nn.sigmoid(
        jax.random.normal(ky2, (4, 300, num_labels), jnp.float32))
    score_big = jax.block_until_ready(score_nn_forward(None, y_big, params))
    ref_big = _reference(y_big, params)
    assert score_big.shape == (4, 300)
    assert jnp.allclose(score_big, ref_big, atol=1e-5, rtol=1e-5)

    print("KERNEL_OK")
</pallas_src>

<mosaic_0001>
module attributes {stable_mosaic.version = 11 : i64} {
  func.func @score_nn_kernel(%arg0: i32, %arg1: memref<16x128xf32, #tpu.memory_space<vmem>>, %arg2: memref<32x16xf32, #tpu.memory_space<vmem>>, %arg3: memref<32x1xf32, #tpu.memory_space<vmem>>, %arg4: memref<1x32xf32, #tpu.memory_space<vmem>>, %arg5: memref<1xf32, #tpu.memory_space<smem>>, %arg6: memref<1x128xf32, #tpu.memory_space<vmem>>) attributes {dimension_semantics = [#tpu.dimension_semantics<parallel>], iteration_bounds = array<i64: 1>, scalar_prefetch = 0 : i64, scratch_operands = 0 : i64, tpu.core_type = #tpu.core_type<tc>, window_params = [{transform_indices = @transform_0, window_bounds = array<i64: 16, 128>}, {pipeline_mode = #tpu.pipeline_mode<synchronous>, transform_indices = @transform_1, window_bounds = array<i64: 32, 16>}, {pipeline_mode = #tpu.pipeline_mode<synchronous>, transform_indices = @transform_2, window_bounds = array<i64: 32, 1>}, {pipeline_mode = #tpu.pipeline_mode<synchronous>, transform_indices = @transform_3, window_bounds = array<i64: 1, 32>}, {transform_indices = @transform_4, window_bounds = array<i64: 1>}, {transform_indices = @transform_5, window_bounds = array<i64: 1, 128>}]} {
    %c0 = arith.constant 0 : index
    %c0_0 = arith.constant 0 : index
    %0 = vector.load %arg1[%c0, %c0_0] : memref<16x128xf32, #tpu.memory_space<vmem>>, vector<16x128xf32>
    %c0_1 = arith.constant 0 : index
    %c0_2 = arith.constant 0 : index
    %1 = vector.load %arg2[%c0_1, %c0_2] : memref<32x16xf32, #tpu.memory_space<vmem>>, vector<32x16xf32>
    %cst = arith.constant dense<0.000000e+00> : vector<32x128xf32>
    %2 = tpu.matmul %1, %0, %cst {dimension_numbers = #tpu.dot_dimension_numbers<[1], [0], [0], [1], [0, 0, 1, 1], [], []>} : vector<32x16xf32>, vector<16x128xf32>, vector<32x128xf32> -> vector<32x128xf32>
    %c0_3 = arith.constant 0 : index
    %c0_4 = arith.constant 0 : index
    %3 = vector.load %arg3[%c0_3, %c0_4] : memref<32x1xf32, #tpu.memory_space<vmem>>, vector<32x1xf32>
    %4 = vector.broadcast %3 : vector<32x1xf32> to vector<32x128xf32>
    %5 = arith.addf %2, %4 : vector<32x128xf32>
    %cst_5 = arith.constant 0.000000e+00 : f32
    %6 = vector.broadcast %cst_5 : f32 to vector<32x128xf32>
    %7 = arith.maximumf %5, %6 : vector<32x128xf32>
    %8 = math.absf %5 : vector<32x128xf32>
    %cst_6 = arith.constant 0.000000e+00 : f32
    %9 = vector.broadcast %cst_6 : f32 to vector<32x128xf32>
    %10 = arith.subf %9, %8 : vector<32x128xf32>
    %11 = math.exp %10 : vector<32x128xf32>
    %12 = math.log1p %11 : vector<32x128xf32>
    %13 = arith.addf %7, %12 : vector<32x128xf32>
    %c0_7 = arith.constant 0 : index
    %c0_8 = arith.constant 0 : index
    %14 = vector.load %arg4[%c0_7, %c0_8] : memref<1x32xf32, #tpu.memory_space<vmem>>, vector<1x32xf32>
    %cst_9 = arith.constant dense<0.000000e+00> : vector<1x128xf32>
    %15 = tpu.matmul %14, %13, %cst_9 {dimension_numbers = #tpu.dot_dimension_numbers<[1], [0], [0], [1], [0, 0, 1, 1], [], []>} : vector<1x32xf32>, vector<32x128xf32>, vector<1x128xf32> -> vector<1x128xf32>
    %c0_10 = arith.constant 0 : index
    %16 = memref.load %arg5[%c0_10] : memref<1xf32, #tpu.memory_space<smem>>
    %17 = vector.broadcast %16 : f32 to vector<1x128xf32>
    %18 = arith.addf %15, %17 : vector<1x128xf32>
    %c0_11 = arith.constant 0 : index
    %c0_12 = arith.constant 0 : index
    %19 = vector.load %arg6[%c0_11, %c0_12] : memref<1x128xf32, #tpu.memory_space<vmem>>, vector<1x128xf32>
    tpu.vector_store %arg6[%c0_11, %c0_12], %18 {strides = array<i32>} : memref<1x128xf32, #tpu.memory_space<vmem>>, vector<1x128xf32>,
    return
  }
  func.func @transform_0(%arg0: i32) -> (i32, i32) {
    %c0_i32 = arith.constant 0 : i32
    %c0_i32_0 = arith.constant 0 : i32
    return %c0_i32, %arg0 : i32, i32
  }
  func.func @transform_1(%arg0: i32) -> (i32, i32) {
    %c0_i32 = arith.constant 0 : i32
    %c0_i32_0 = arith.constant 0 : i32
    %c0_i32_1 = arith.constant 0 : i32
    return %c0_i32, %c0_i32_0 : i32, i32
  }
  func.func @transform_2(%arg0: i32) -> (i32, i32) {
    %c0_i32 = arith.constant 0 : i32
    %c0_i32_0 = arith.constant 0 : i32
    %c0_i32_1 = arith.constant 0 : i32
    return %c0_i32, %c0_i32_0 : i32, i32
  }
  func.func @transform_3(%arg0: i32) -> (i32, i32) {
    %c0_i32 = arith.constant 0 : i32
    %c0_i32_0 = arith.constant 0 : i32
    %c0_i32_1 = arith.constant 0 : i32
    return %c0_i32, %c0_i32_0 : i32, i32
  }
  func.func @transform_4(%arg0: i32) -> i32 {
    %c0_i32 = arith.constant 0 : i32
    %c0_i32_0 = arith.constant 0 : i32
    return %c0_i32 : i32
  }
  func.func @transform_5(%arg0: i32) -> (i32, i32) {
    %c0_i32 = arith.constant 0 : i32
    %c0_i32_0 = arith.constant 0 : i32
    return %c0_i32, %arg0 : i32, i32
  }
}

</mosaic_0001>

<bundles_post_ra>
// kernel: squeeze.1
= control target key start
LH: loop header
LB: loop body
LE: loop exit
PB: predicated region body
PF: predicated region fallthrough
CT: control target
= control target key end

     0   :  { %s80_s0 = inlined_call_operand.vmem [shape: f32[16], index: 0, kind: input, shape index: {}]   ;;  %s81_s1 = inlined_call_operand.hbm [shape: f32[2,8], index: 1, kind: output, shape index: {}]  }
   0x1   :  { %v5_v0 = vld [vmem:[%s80_s0] sm:$0x1] }
   0x2   :  { %2 = vsyncpa [#allocation1], 0  ;;  %6 = vst [vmem:[#allocation3] sm:$0x1] %v5_v0  ;;  %vm8_vm0 = vcmask 64512   ;;  %s62_s0 = smov 120  }
   0x3   :  { %s63_s8 = smov [#allocation0]   ;;  %s27_s1 = sshll.u32 %s81_s1, 4  ;;  %s28_s1 = int_to_ptr.hbm [resolvable:$true] %s27_s1 }
   0x4   :  { %s25_s9 = sshll.u32 %s63_s8, 4  ;;  %s26_s9 = int_to_ptr.vmem [resolvable:$true] %s25_s9 }
   0x9   :  { %v10_v1 = vld [vmem:[#allocation3] sm:$0x1]  }
   0xa   :  { %v7_v2 = vld [vmem:[#allocation3] sm:$0x1]   ;;  %11 = vrot.lane.b32.xlu0 %v10_v1, %s62_s0 }
   0xb   :  { %9 = vst.msk [vmem:[#allocation2] sm:$0x1] %vm8_vm0, %v7_v2  }
  0x7c   :  { %v12_v3 = vpop.permute.xlu0 %11  }
  0x7d   :  { %15 = vst.msk [vmem:[#allocation2 + $0x1] sm:$0x1] %vm8_vm0, %v12_v3  }
  0x84   :  { %v18_v4 = vld [vmem:[#allocation2] sm:$0x3] }
  0x85   :  { %21 = vst [vmem:[#allocation0] sm:$0x3] %v18_v4 }
  0x86   :  { %30 = dma.vmem_to_hbm [thread:$0]  %s26_s9, 32, %s28_s1, [#allocation1]  }
  0x87   :  { %60 = dma.done.wait [#allocation1], 32  }
  0x88   :  { %61 = vsyncadd [#allocation1], 4294967264 }
  0x89   :  { %33 = vsyncpa [#allocation1], 1 }

// kernel: score_nn_forward.1
= control target key start
LH: loop header
LB: loop body
LE: loop exit
PB: predicated region body
PF: predicated region fallthrough
CT: control target
= control target key end

     0   :  { %v213_v2 = vmov 0   ;;  %vm51_vm0 = vcmask 130048   ;;  %vm156_vm5 = vcmask 261120   ;;  %s295_s0 = inlined_call_operand.vmem [shape: f32[16,128], index: 0, kind: input, shape index: {}]   ;;  %s296_s1 = inlined_call_operand.vmem [shape: f32[32,16], index: 1, kind: input, shape index: {}]   ;;  %s297_s2 = inlined_call_operand.vmem [shape: f32[32,1], index: 2, kind: input, shape index: {}]   ;;  %s298_s3 = inlined_call_operand.vmem [shape: f32[1,32], index: 3, kind: input, shape index: {}]   ;;  %s299_s4 = inlined_call_operand.<no memory space> [shape: f32[1], index: 4, kind: input, shape index: {}]   ;;  %s300_s5 = inlined_call_operand.vmem [shape: f32[1,128], index: 5, kind: output, shape index: {}]  }
   0x1   :  { %v22_v0 = vld [vmem:[%s295_s0 + $0x8] sm:$0xff]  ;;  %v21_v1 = vld [vmem:[%s295_s0] sm:$0xff]  ;;  %196 = vset.pattern.permute.xlu1 %v213_v2  ;;  %195 = vset.pattern.permute.xlu0 %v213_v2  ;;  %v26_v6 = vld [vmem:[%s296_s1 + $0x18] sm:$0xff] }
   0x2   :  { %78 = vmatpush.msra.mxu0 %v22_v0  ;;  %190 = vmatpush.msra.mxu2 %v22_v0  ;;  %v23_v3 = vld [vmem:[%s296_s1] sm:$0xff]  ;;  %v28_v4 = vld [vmem:[%s297_s2 + $0x8] sm:$0xff]  ;;  %v30_v7 = vld [vmem:[%s297_s2 + $0x18] sm:$0xff] }
   0x3   :  { %191 = vmatpush.msra.mxu3 %v22_v0  ;;  %v24_v5 = vld [vmem:[%s296_s1 + $0x8] sm:$0xff]  ;;  %38 = vperm.xlu1 %196, %v28_v4   ;;  %v27_v8 = vld [vmem:[%s297_s2] sm:$0xff]  ;;  %v25_v9 = vld [vmem:[%s296_s1 + $0x10] sm:$0xff] }
   0x4   :  { %79 = vmatpush.msra.mxu0 %v21_v1  ;;  %192 = vmatpush.msra.mxu2 %v21_v1  ;;  %v29_v10 = vld [vmem:[%s297_s2 + $0x10] sm:$0xff] }
   0x5   :  { %193 = vmatpush.msra.mxu3 %v21_v1  ;;  %185 = vmatmul.msk.f32.vlgmr.msra.gmra.mxu0 %vm51_vm0, %v23_v3 }
   0x6   :  { %186 = vmatmul.msk.f32.vlgmr.msra.gmra.mxu2 %vm51_vm0, %v24_v5  ;;  %188 = vmatmul.msk.f32.vlgmr.msra.gmra.mxu3 %vm51_vm0, %v26_v6 }
   0x7   :  { %48 = vperm.xlu0 %195, %v30_v7  }
   0xb   :  { %33 = vperm.xlu1 %196, %v27_v8  }
   0xe   :  { %187 = vmatmul.msk.f32.gmra.mxu2 %vm51_vm0, %v25_v9 }
   0xf   :  { %43 = vperm.xlu0 %195, %v29_v10  }
  0x75   :  { %v39_v11 = vpop.permute.xlu1 %38 }
  0x79   :  { %v49_v15 = vpop.permute.xlu0 %48 }
  0x7d   :  { %v34_v12 = vpop.permute.xlu1 %33 }
  0x81   :  { %v44_v29 = vpop.permute.xlu0 %43 }
  0x82   :  { %v81_v13 = vpop.f32.mrf.mxu0 }
  0x83   :  { %v278_v14 = vadd.f32 %v81_v13, %v34_v12 }
  0x85   :  { %v97_v16 = vand.u32 2147483647, %v278_v14  ;;  %v93_v12 = vmax.f32 %v278_v14, 0.0 }
  0x87   :  { %v101_v21 = vsub.f32 0.0, %v97_v16  ;;  %v153_v16 = vld [vmem:[%s298_s3] sm:$0x1] }
  0x89   :  { %v84_v17 = vpop.f32.mrf.mxu2  ;;  %v90_v18 = vpop.f32.mrf.mxu3  ;;  %v105_v26 = vmul.f32 1.442695, %v101_v21 }
  0x8a   :  { %v281_v19 = vadd.f32 %v84_v17, %v39_v11  ;;  %v91_v20 = vadd.f32 %v90_v18, %v49_v15  ;;  %v155_v17 = vstv %s299_s4 }
  0x8c   :  { %v98_v22 = vand.u32 2147483647, %v281_v19  ;;  %v100_v23 = vand.u32 2147483647, %v91_v20  ;;  %v96_v52 = vmax.f32 %v91_v20, 0.0  ;;  %v94_v9 = vmax.f32 %v281_v19, 0.0 }
  0x8e   :  { %v102_v24 = vsub.f32 0.0, %v98_v22  ;;  %v104_v25 = vsub.f32 0.0, %v100_v23 }
  0x90   :  { %v107_v27 = vmul.f32 1.442695, %v102_v24  ;;  %v111_v28 = vmul.f32 1.442695, %v104_v25 }
  0x91   :  { %v87_v30 = vpop.f32.mrf.mxu2 }
  0x92   :  { %197 = vpow2.f32 %v107_v27  ;;  %v88_v31 = vadd.f32 %v87_v30, %v44_v29 }
  0x93   :  { %199 = vpow2.f32 %v111_v28 }
  0x94   :  { %201 = vpow2.f32 %v105_v26  ;;  %v99_v32 = vand.u32 2147483647, %v88_v31  ;;  %v95_v1 = vmax.f32 %v88_v31, 0.0 }
  0x96   :  { %v103_v33 = vsub.f32 0.0, %v99_v32 }
  0x98   :  { %v198_v34 = vpop.eup %197  ;;  %v109_v35 = vmul.f32 1.442695, %v103_v33 }
  0x99   :  { %v200_v36 = vpop.eup %199  ;;  %v122_v40 = vadd.f32 1.0, %v198_v34  ;;  %v125_v49 = vmul.f32 -0.5, %v198_v34  ;;  %v128_v61 = vand.u32 2147483647, %v198_v34 }
  0x9a   :  { %v202_v37 = vpop.eup %201  ;;  %203 = vpow2.f32 %v109_v35  ;;  %v140_v38 = vadd.f32 1.0, %v200_v36  ;;  %v143_v39 = vmul.f32 -0.5, %v200_v36  ;;  %v146_v44 = vand.u32 2147483647, %v200_v36 }
  0x9b   :  { %v113_v41 = vadd.f32 1.0, %v202_v37  ;;  %v116_v46 = vmul.f32 -0.5, %v202_v37  ;;  %v126_v58 = vadd.f32 1.0, %v125_v49  ;;  %v119_v62 = vand.u32 2147483647, %v202_v37 }
  0x9c   :  { %205 = vlog2.f32 %v140_v38  ;;  %v144_v42 = vadd.f32 1.0, %v143_v39  ;;  %vm147_vm1 = vcmp.lt.f32.partialorder %v146_v44, 0.0004427343  ;;  %vm129_vm3 = vcmp.lt.f32.partialorder %v128_v61, 0.0004427343 }
  0x9d   :  { %207 = vlog2.f32 %v122_v40  ;;  %v117_v55 = vadd.f32 1.0, %v116_v46  ;;  %v127_v5 = vmul.f32 %v198_v34, %v126_v58  ;;  %vm120_vm4 = vcmp.lt.f32.partialorder %v119_v62, 0.0004427343 }
  0x9e   :  { %209 = vlog2.f32 %v113_v41  ;;  %v145_v51 = vmul.f32 %v200_v36, %v144_v42 }
  0x9f   :  { %v118_v2 = vmul.f32 %v202_v37, %v117_v55 }
  0xa0   :  { %v204_v43 = vpop.eup %203 }
  0xa1   :  { %v131_v45 = vadd.f32 1.0, %v204_v43  ;;  %v134_v48 = vmul.f32 -0.5, %v204_v43  ;;  %v137_v60 = vand.u32 2147483647, %v204_v43 }
  0xa2   :  { %v206_v47 = vpop.eup %205 }
  0xa3   :  { %v142_v50 = vmul.f32 0.6931472, %v206_v47  ;;  %211 = vlog2.f32 %v131_v45  ;;  %v208_v53 = vpop.eup %207  ;;  %v135_v57 = vadd.f32 1.0, %v134_v48  ;;  %vm138_vm2 = vcmp.lt.f32.partialorder %v137_v60, 0.0004427343 }
  0xa4   :  { %v210_v59 = vpop.eup %209  ;;  %v124_v63 = vmul.f32 0.6931472, %v208_v53 }
  0xa5   :  { %v148_v54 = vsel %vm147_vm1, %v145_v51, %v142_v50  ;;  %v136_v4 = vmul.f32 %v204_v43, %v135_v57  ;;  %v115_v6 = vmul.f32 0.6931472, %v210_v59 }
  0xa6   :  { %v152_v56 = vadd.f32 %v148_v54, %v96_v52  ;;  %v130_v8 = vsel %vm129_vm3, %v127_v5, %v124_v63 }
  0xa7   :  { %v121_v11 = vsel %vm120_vm4, %v118_v2, %v115_v6  ;;  %v150_v13 = vadd.f32 %v130_v8, %v94_v9 }
  0xa8   :  { %172 = vmatpush.msra.mxu1 %v152_v56  ;;  %v149_v15 = vadd.f32 %v121_v11, %v93_v12 }
  0xa9   :  { %v212_v0 = vpop.eup %211 }
  0xaa   :  { %v133_v3 = vmul.f32 0.6931472, %v212_v0 }
  0xac   :  { %v139_v7 = vsel %vm138_vm2, %v136_v4, %v133_v3 }
  0xad   :  { %v151_v10 = vadd.f32 %v139_v7, %v95_v1 }
  0xaf   :  { %173 = vmatpush.msra.mxu1 %v151_v10 }
  0xb1   :  { %174 = vmatpush.msra.mxu1 %v150_v13 }
  0xb3   :  { %175 = vmatpush.msra.mxu1 %v149_v15 }
  0xb4   :  { %189 = vmatmul.msk.f32.vlgmr.msra.gmra.mxu1 %vm156_vm5, %v153_v16 }
 0x131   :  { %v177_v18 = vpop.f32.mrf.mxu1 }
 0x132   :  { %v178_v19 = vadd.f32 %v177_v18, %v155_v17 }
 0x134   :  { %180 = vst [vmem:[%s300_s5] sm:$0x1] %v178_v19 }

</bundles_post_ra>
